<compile_context>
chip_gen: v6e
topology: v6e:2x2x1
jax: 0.10.0
libtpu: 0.0.40
codegen_flags: <defaults>
</compile_context>

<pallas_src>
import functools

import jax
import jax.numpy as jnp
from jax.experimental import pallas as pl
from jax.experimental.pallas import tpu as pltpu

# ----------------------------- configuration -------------------------------
BATCH = 8
SEQ = 16
VOCAB = 100
HIDDEN = 128          # hidden_size
NUM_HEADS = 4
FFN = 4 * HIDDEN
MLP_SIZES = (64, 32)  # mlp_layers_config: two 'Dense' layers (ReLU, Tanh)
NUM_CLASSES = 8
BN_EPS = 1e-5         # PyTorch BatchNorm1d default
PAD = 128             # lane-dense padded feature width for the whole head chain
BSUB = 8              # sublane replication of each packed bias (== BATCH)
NEG_INF = -1e30


# --------------------------- Pallas head kernel ----------------------------
def head_kernel(h_ref, w_ref, b_ref, logits_ref, prob_ref, pred_ref):
    """Fused CLS slice + BERT pooler + (BN-folded) MLP head + softmax + argmax.

    h_ref      : [B, S, 128] f32   full last_hidden_state (CLS sliced in-kernel)
    w_ref      : [512, 128] bf16   packed weights (pooler | fc1' | fc2' | out), each 128x128
    b_ref      : [32, 128]  f32    packed biases, each replicated across 8 sublanes
    logits_ref : [B, 128]   f32    padded logits (cols >= NUM_CLASSES are exactly 0)
    prob_ref   : [B, 128]   f32    padded softmax probabilities (pad cols exactly 0)
    pred_ref   : [B, 128]   i32    argmax class id broadcast across all lanes
    """
    x = h_ref[:, 0, :]                       # CLS token, (B, 128) f32 — fused, no XLA slice

    def mm(a_f32, w_bf16):
        # bf16 MXU operands, f32 accumulation.
        return jnp.dot(a_f32.astype(jnp.bfloat16), w_bf16,
                       preferred_element_type=jnp.float32)

    # BERT pooler: tanh(dense(CLS))
    pooled = jnp.tanh(mm(x, w_ref[0:PAD, :]) + b_ref[0:BSUB, :])

    # Dense 1: Linear+BN (folded) -> ReLU   (Dropout is identity in eval mode)
    h = jnp.maximum(mm(pooled, w_ref[PAD:2 * PAD, :]) + b_ref[BSUB:2 * BSUB, :], 0.0)

    # Dense 2: Linear+BN (folded) -> Tanh   (Dropout is identity in eval mode)
    h = jnp.tanh(mm(h, w_ref[2 * PAD:3 * PAD, :]) + b_ref[2 * BSUB:3 * BSUB, :])

    # Output Linear -> logits (padded class columns are exactly 0 by construction)
    logits = mm(h, w_ref[3 * PAD:4 * PAD, :]) + b_ref[3 * BSUB:4 * BSUB, :]

    # predict=True, multi_class=True: softmax over the real classes only
    lane = jax.lax.broadcasted_iota(jnp.int32, logits.shape, 1)
    valid = lane < NUM_CLASSES
    masked = jnp.where(valid, logits, NEG_INF)
    m = jnp.max(masked, axis=-1, keepdims=True)
    e = jnp.where(valid, jnp.exp(masked - m), 0.0)
    denom = jnp.sum(e, axis=-1, keepdims=True)
    prob = e / denom                          # exact divide: rows sum to 1 (review note)

    # in-kernel argmax (first-max tie-break, matches torch.argmax); XLU reduce is free filler
    idx = jnp.where(masked == m, lane, PAD)
    pred = jnp.min(idx, axis=-1, keepdims=True).astype(jnp.int32)   # (B, 1)

    logits_ref[...] = logits
    prob_ref[...] = prob
    pred_ref[...] = jnp.broadcast_to(pred, logits.shape).astype(jnp.int32)


def mlp_head_pallas(hidden, w_packed, b_packed):
    """Single pallas_call, no grid (head is dispatch/latency bound; grid adds overhead).

    hidden: [B, S, HIDDEN] f32 last_hidden_state.
    """
    B = hidden.shape[0]
    assert B == BSUB, "bias slab is replicated to 8 sublanes; keep BATCH == 8"
    vmem = pl.BlockSpec(memory_space=pltpu.MemorySpace.VMEM)
    logits_pad, prob_pad, pred_pad = pl.pallas_call(
        head_kernel,
        out_shape=(jax.ShapeDtypeStruct((B, PAD), jnp.float32),
                   jax.ShapeDtypeStruct((B, PAD), jnp.float32),
                   jax.ShapeDtypeStruct((B, PAD), jnp.int32)),
        in_specs=[vmem, vmem, vmem],
        out_specs=(vmem, vmem, vmem),
    )(hidden, w_packed, b_packed)
    # cheap contiguous slices only (lane-dense 128-wide blocks kept per review)
    logits = logits_pad[:, :NUM_CLASSES]
    prob = prob_pad[:, :NUM_CLASSES]
    pred = pred_pad[:, 0]
    return logits, prob, pred


# -------------------- host-side fold / pad / pack of head ------------------
def pack_head_params(p):
    """Fold eval-mode BN into the Linears, zero-pad to 128-wide, pack, cast weights to bf16."""
    def pad_w(a):
        return jnp.zeros((PAD, PAD), jnp.float32).at[:a.shape[0], :a.shape[1]].set(a)

    def pad_b(vec):
        row = jnp.zeros((1, PAD), jnp.float32).at[:, :vec.shape[-1]].set(vec.reshape(1, -1))
        return jnp.tile(row, (BSUB, 1))      # replicate across 8 sublanes -> aligned vreg add

    s1 = p["bn1_g"] * jax.lax.rsqrt(p["bn1_v"] + BN_EPS)          # (1, 64)
    w1 = p["fc1_w"] * s1                                          # (128, 64)
    b1 = (p["fc1_b"] - p["bn1_m"]) * s1 + p["bn1_b"]              # (1, 64)

    s2 = p["bn2_g"] * jax.lax.rsqrt(p["bn2_v"] + BN_EPS)          # (1, 32)
    w2 = p["fc2_w"] * s2                                          # (64, 32)
    b2 = (p["fc2_b"] - p["bn2_m"]) * s2 + p["bn2_b"]              # (1, 32)

    w_packed = jnp.concatenate([
        pad_w(p["pool_w"]), pad_w(w1), pad_w(w2), pad_w(p["out_w"]),
    ], axis=0).astype(jnp.bfloat16)                               # (512, 128) bf16

    b_packed = jnp.concatenate([
        pad_b(p["pool_b"]), pad_b(b1), pad_b(b2), pad_b(p["out_b"]),
    ], axis=0)                                                    # (32, 128) f32
    return w_packed, b_packed


# ------------------- toy deterministic BERT encoder (glue) -----------------
def layer_norm(x, g, b, eps=1e-12):
    mu = jnp.mean(x, axis=-1, keepdims=True)
    var = jnp.mean((x - mu) ** 2, axis=-1, keepdims=True)
    return (x - mu) * jax.lax.rsqrt(var + eps) * g + b


def toy_bert_encoder(p, input_ids, attention_mask, token_type_ids):
    x = (p["word_emb"][input_ids]
         + p["pos_emb"][None, :, :]
         + p["type_emb"][token_type_ids])
    x = layer_norm(x, p["ln_emb_g"], p["ln_emb_b"])

    B, S, H = x.shape
    hd = H // NUM_HEADS

    def split(t):
        return t.reshape(B, S, NUM_HEADS, hd).transpose(0, 2, 1, 3)

    q = split(x @ p["wq"] + p["bq"])
    k = split(x @ p["wk"] + p["bk"])
    v = split(x @ p["wv"] + p["bv"])
    scores = jnp.einsum("bhqd,bhkd->bhqk", q, k) / jnp.sqrt(jnp.float32(hd))
    addmask = (1.0 - attention_mask[:, None, None, :].astype(jnp.float32)) * -1e9
    attn = jax.nn.softmax(scores + addmask, axis=-1)
    ctx = jnp.einsum("bhqk,bhkd->bhqd", attn, v).transpose(0, 2, 1, 3).reshape(B, S, H)
    x = layer_norm(x + ctx @ p["wo"] + p["bo"], p["ln1_g"], p["ln1_b"])

    ff = jax.nn.gelu(x @ p["wff1"] + p["bff1"]) @ p["wff2"] + p["bff2"]
    x = layer_norm(x + ff, p["ln2_g"], p["ln2_b"])
    return x  # [B, S, H] last_hidden_state


# ----------------------------- parameter init ------------------------------
def make_params(key):
    ks = iter(jax.random.split(key, 64))
    n = lambda shape, s=0.02: (s * jax.random.normal(next(ks), shape)).astype(jnp.float32)
    u = lambda shape: jax.random.uniform(next(ks), shape, jnp.float32, 0.5, 1.5)

    p = {
        # toy encoder
        "word_emb": n((VOCAB, HIDDEN)), "pos_emb": n((SEQ, HIDDEN)), "type_emb": n((2, HIDDEN)),
        "ln_emb_g": jnp.ones((HIDDEN,), jnp.float32), "ln_emb_b": jnp.zeros((HIDDEN,), jnp.float32),
        "wq": n((HIDDEN, HIDDEN)), "bq": n((HIDDEN,)),
        "wk": n((HIDDEN, HIDDEN)), "bk": n((HIDDEN,)),
        "wv": n((HIDDEN, HIDDEN)), "bv": n((HIDDEN,)),
        "wo": n((HIDDEN, HIDDEN)), "bo": n((HIDDEN,)),
        "ln1_g": jnp.ones((HIDDEN,), jnp.float32), "ln1_b": jnp.zeros((HIDDEN,), jnp.float32),
        "wff1": n((HIDDEN, FFN)), "bff1": n((FFN,)),
        "wff2": n((FFN, HIDDEN)), "bff2": n((HIDDEN,)),
        "ln2_g": jnp.ones((HIDDEN,), jnp.float32), "ln2_b": jnp.zeros((HIDDEN,), jnp.float32),
        # pooler (part of BERT) — consumed by the Pallas kernel
        "pool_w": n((HIDDEN, HIDDEN), 0.05), "pool_b": n((1, HIDDEN)),
        # fc head (build_mlp_layers) — consumed by the Pallas kernel
        "fc1_w": n((HIDDEN, MLP_SIZES[0]), 0.05), "fc1_b": n((1, MLP_SIZES[0])),
        "bn1_g": u((1, MLP_SIZES[0])), "bn1_b": n((1, MLP_SIZES[0])),
        "bn1_m": n((1, MLP_SIZES[0])), "bn1_v": u((1, MLP_SIZES[0])),
        "fc2_w": n((MLP_SIZES[0], MLP_SIZES[1]), 0.05), "fc2_b": n((1, MLP_SIZES[1])),
        "bn2_g": u((1, MLP_SIZES[1])), "bn2_b": n((1, MLP_SIZES[1])),
        "bn2_m": n((1, MLP_SIZES[1])), "bn2_v": u((1, MLP_SIZES[1])),
        "out_w": n((MLP_SIZES[1], NUM_CLASSES), 0.05), "out_b": n((1, NUM_CLASSES)),
    }
    return p


# --------------------- pure-JAX head reference (f32) -----------------------
def head_reference(cls_tok, p):
    pooled = jnp.tanh(cls_tok @ p["pool_w"] + p["pool_b"])
    h = pooled @ p["fc1_w"] + p["fc1_b"]
    h = (h - p["bn1_m"]) * jax.lax.rsqrt(p["bn1_v"] + BN_EPS) * p["bn1_g"] + p["bn1_b"]
    h = jnp.maximum(h, 0.0)
    h = h @ p["fc2_w"] + p["fc2_b"]
    h = (h - p["bn2_m"]) * jax.lax.rsqrt(p["bn2_v"] + BN_EPS) * p["bn2_g"] + p["bn2_b"]
    h = jnp.tanh(h)
    logits = h @ p["out_w"] + p["out_b"]
    return logits, jax.nn.softmax(logits, axis=-1)


# ------------------------------ forward pass -------------------------------
@functools.partial(jax.jit, static_argnums=(6,))
def base_model_forward(params, head_w, head_b, input_ids, attention_mask,
                       token_type_ids, predict=True):
    hidden = toy_bert_encoder(params, input_ids, attention_mask, token_type_ids)
    # CLS slice, pooler, head, softmax and argmax all happen inside the Pallas kernel.
    # NOTE: when serving with multiple microbatches, concatenate CLS rows (up to ~128 on
    # v5e / ~256 on v6e,v7x) into one call to fill the MXU M dimension for free.
    logits, prob, pred = mlp_head_pallas(hidden, head_w, head_b)
    if predict:  # multi_class=True, multi_label=False
        return logits, prob, pred
    return logits, None, None


# ---------------------------------- main -----------------------------------
if __name__ == "__main__":
    key = jax.random.PRNGKey(0)
    kp, ki = jax.random.split(key)
    params = make_params(kp)
    head_w, head_b = pack_head_params(params)   # BN folding + padding + packing on the host

    input_ids = jax.random.randint(ki, (BATCH, SEQ), 0, VOCAB, dtype=jnp.int32)
    # pad the last 4 positions of the second half of the batch
    pos = jax.lax.broadcasted_iota(jnp.int32, (BATCH, SEQ), 1)
    row = jax.lax.broadcasted_iota(jnp.int32, (BATCH, SEQ), 0)
    attention_mask = jnp.where((row >= BATCH // 2) & (pos >= SEQ - 4), 0, 1).astype(jnp.int32)
    token_type_ids = jnp.zeros((BATCH, SEQ), jnp.int32)

    logits, prob, pred = base_model_forward(params, head_w, head_b, input_ids,
                                            attention_mask, token_type_ids, True)
    jax.block_until_ready((logits, prob, pred))

    # shape / dtype / sanity checks
    assert logits.shape == (BATCH, NUM_CLASSES) and logits.dtype == jnp.float32
    assert prob.shape == (BATCH, NUM_CLASSES) and prob.dtype == jnp.float32
    assert pred.shape == (BATCH,) and pred.dtype == jnp.int32
    assert bool(jnp.all(jnp.isfinite(logits)))
    assert bool(jnp.allclose(jnp.sum(prob, axis=-1), 1.0, atol=1e-5))
    assert bool(jnp.all(pred == jnp.argmax(logits, axis=-1).astype(jnp.int32)))

    # loose parity vs. the unfolded f32 reference (bf16 matmuls + folded BN)
    cls_ref = toy_bert_encoder(params, input_ids, attention_mask, token_type_ids)[:, 0, :]
    ref_logits, ref_prob = head_reference(cls_ref, params)
    assert bool(jnp.max(jnp.abs(logits - ref_logits)) < 5e-2)
    assert bool(jnp.max(jnp.abs(prob - ref_prob)) < 2e-2)

    print("KERNEL_OK")
</pallas_src>

<mosaic_0001>
module attributes {stable_mosaic.version = 11 : i64} {
  func.func @head_kernel(%arg0: memref<8x16x128xf32, #tpu.memory_space<vmem>>, %arg1: memref<512x128xbf16, #tpu.memory_space<vmem>>, %arg2: memref<32x128xf32, #tpu.memory_space<vmem>>, %arg3: memref<8x128xf32, #tpu.memory_space<vmem>>, %arg4: memref<8x128xf32, #tpu.memory_space<vmem>>, %arg5: memref<8x128xi32, #tpu.memory_space<vmem>>) attributes {dimension_semantics = [], scalar_prefetch = 0 : i64, scratch_operands = 0 : i64, tpu.core_type = #tpu.core_type<tc>} {
    %c0 = arith.constant 0 : index
    %c0_0 = arith.constant 0 : index
    %c0_1 = arith.constant 0 : index
    %0 = vector.load %arg0[%c0, %c0_0, %c0_1] : memref<8x16x128xf32, #tpu.memory_space<vmem>>, vector<8x1x128xf32>
    %1 = vector.shape_cast %0 : vector<8x1x128xf32> to vector<8x128xf32>
    %c0_2 = arith.constant 0 : index
    %c0_3 = arith.constant 0 : index
    %2 = vector.load %arg1[%c0_2, %c0_3] : memref<512x128xbf16, #tpu.memory_space<vmem>>, vector<128x128xbf16>
    %3 = arith.truncf %1 : vector<8x128xf32> to vector<8x128xbf16>
    %cst = arith.constant dense<0.000000e+00> : vector<8x128xf32>
    %4 = tpu.matmul %3, %2, %cst {dimension_numbers = #tpu.dot_dimension_numbers<[1], [0], [0], [1], [0, 0, 1, 1], [], []>} : vector<8x128xbf16>, vector<128x128xbf16>, vector<8x128xf32> -> vector<8x128xf32>
    %c0_4 = arith.constant 0 : index
    %c0_5 = arith.constant 0 : index
    %5 = vector.load %arg2[%c0_4, %c0_5] : memref<32x128xf32, #tpu.memory_space<vmem>>, vector<8x128xf32>
    %6 = arith.addf %4, %5 : vector<8x128xf32>
    %7 = math.tanh %6 : vector<8x128xf32>
    %c128 = arith.constant 128 : index
    %c0_6 = arith.constant 0 : index
    %8 = vector.load %arg1[%c128, %c0_6] : memref<512x128xbf16, #tpu.memory_space<vmem>>, vector<128x128xbf16>
    %9 = arith.truncf %7 : vector<8x128xf32> to vector<8x128xbf16>
    %cst_7 = arith.constant dense<0.000000e+00> : vector<8x128xf32>
    %10 = tpu.matmul %9, %8, %cst_7 {dimension_numbers = #tpu.dot_dimension_numbers<[1], [0], [0], [1], [0, 0, 1, 1], [], []>} : vector<8x128xbf16>, vector<128x128xbf16>, vector<8x128xf32> -> vector<8x128xf32>
    %c8 = arith.constant 8 : index
    %c0_8 = arith.constant 0 : index
    %11 = vector.load %arg2[%c8, %c0_8] : memref<32x128xf32, #tpu.memory_space<vmem>>, vector<8x128xf32>
    %12 = arith.addf %10, %11 : vector<8x128xf32>
    %cst_9 = arith.constant 0.000000e+00 : f32
    %13 = vector.broadcast %cst_9 : f32 to vector<8x128xf32>
    %14 = arith.maximumf %12, %13 : vector<8x128xf32>
    %c256 = arith.constant 256 : index
    %c0_10 = arith.constant 0 : index
    %15 = vector.load %arg1[%c256, %c0_10] : memref<512x128xbf16, #tpu.memory_space<vmem>>, vector<128x128xbf16>
    %16 = arith.truncf %14 : vector<8x128xf32> to vector<8x128xbf16>
    %cst_11 = arith.constant dense<0.000000e+00> : vector<8x128xf32>
    %17 = tpu.matmul %16, %15, %cst_11 {dimension_numbers = #tpu.dot_dimension_numbers<[1], [0], [0], [1], [0, 0, 1, 1], [], []>} : vector<8x128xbf16>, vector<128x128xbf16>, vector<8x128xf32> -> vector<8x128xf32>
    %c16 = arith.constant 16 : index
    %c0_12 = arith.constant 0 : index
    %18 = vector.load %arg2[%c16, %c0_12] : memref<32x128xf32, #tpu.memory_space<vmem>>, vector<8x128xf32>
    %19 = arith.addf %17, %18 : vector<8x128xf32>
    %20 = math.tanh %19 : vector<8x128xf32>
    %c384 = arith.constant 384 : index
    %c0_13 = arith.constant 0 : index
    %21 = vector.load %arg1[%c384, %c0_13] : memref<512x128xbf16, #tpu.memory_space<vmem>>, vector<128x128xbf16>
    %22 = arith.truncf %20 : vector<8x128xf32> to vector<8x128xbf16>
    %cst_14 = arith.constant dense<0.000000e+00> : vector<8x128xf32>
    %23 = tpu.matmul %22, %21, %cst_14 {dimension_numbers = #tpu.dot_dimension_numbers<[1], [0], [0], [1], [0, 0, 1, 1], [], []>} : vector<8x128xbf16>, vector<128x128xbf16>, vector<8x128xf32> -> vector<8x128xf32>
    %c24 = arith.constant 24 : index
    %c0_15 = arith.constant 0 : index
    %24 = vector.load %arg2[%c24, %c0_15] : memref<32x128xf32, #tpu.memory_space<vmem>>, vector<8x128xf32>
    %25 = arith.addf %23, %24 : vector<8x128xf32>
    %26 = tpu.iota {dimensions = array<i32: 1>} : vector<8x128xi32>
    %c8_i32 = arith.constant 8 : i32
    %27 = vector.broadcast %c8_i32 : i32 to vector<8x128xi32>
    %28 = arith.cmpi slt, %26, %27 : vector<8x128xi32>
    %cst_16 = arith.constant -1.000000e+30 : f32
    %29 = vector.broadcast %cst_16 : f32 to vector<8x128xf32>
    %30 = arith.select %28, %25, %29 : vector<8x128xi1>, vector<8x128xf32>
    %cst_17 = arith.constant dense<0xFF800000> : vector<8xf32>
    %31 = vector.multi_reduction <maximumf>, %30, %cst_17 [1] : vector<8x128xf32> to vector<8xf32>
    %32 = vector.shape_cast %31 : vector<8xf32> to vector<8x1xf32>
    %33 = vector.broadcast %32 : vector<8x1xf32> to vector<8x128xf32>
    %34 = arith.subf %30, %33 : vector<8x128xf32>
    %35 = math.exp %34 : vector<8x128xf32>
    %cst_18 = arith.constant 0.000000e+00 : f32
    %36 = vector.broadcast %cst_18 : f32 to vector<8x128xf32>
    %37 = arith.select %28, %35, %36 : vector<8x128xi1>, vector<8x128xf32>
    %cst_19 = arith.constant dense<0.000000e+00> : vector<8xf32>
    %38 = vector.multi_reduction <add>, %37, %cst_19 [1] : vector<8x128xf32> to vector<8xf32>
    %39 = vector.shape_cast %38 : vector<8xf32> to vector<8x1xf32>
    %40 = vector.broadcast %39 : vector<8x1xf32> to vector<8x128xf32>
    %41 = arith.divf %37, %40 : vector<8x128xf32>
    %42 = vector.broadcast %32 : vector<8x1xf32> to vector<8x128xf32>
    %43 = arith.cmpf oeq, %30, %42 : vector<8x128xf32>
    %c128_i32 = arith.constant 128 : i32
    %44 = vector.broadcast %c128_i32 : i32 to vector<8x128xi32>
    %45 = arith.select %43, %26, %44 : vector<8x128xi1>, vector<8x128xi32>
    %cst_20 = arith.constant dense<2147483647> : vector<8xi32>
    %46 = vector.multi_reduction <minsi>, %45, %cst_20 [1] : vector<8x128xi32> to vector<8xi32>
    %47 = vector.shape_cast %46 : vector<8xi32> to vector<8x1xi32>
    %c0_21 = arith.constant 0 : index
    %c0_22 = arith.constant 0 : index
    %48 = vector.load %arg3[%c0_21, %c0_22] : memref<8x128xf32, #tpu.memory_space<vmem>>, vector<8x128xf32>
    tpu.vector_store %arg3[%c0_21, %c0_22], %25 {strides = array<i32>} : memref<8x128xf32, #tpu.memory_space<vmem>>, vector<8x128xf32>,
    %c0_23 = arith.constant 0 : index
    %c0_24 = arith.constant 0 : index
    %49 = vector.load %arg4[%c0_23, %c0_24] : memref<8x128xf32, #tpu.memory_space<vmem>>, vector<8x128xf32>
    tpu.vector_store %arg4[%c0_23, %c0_24], %41 {strides = array<i32>} : memref<8x128xf32, #tpu.memory_space<vmem>>, vector<8x128xf32>,
    %50 = vector.shape_cast %47 : vector<8x1xi32> to vector<8x1xi32>
    %51 = vector.broadcast %50 : vector<8x1xi32> to vector<8x128xi32>
    %c0_25 = arith.constant 0 : index
    %c0_26 = arith.constant 0 : index
    %52 = vector.load %arg5[%c0_25, %c0_26] : memref<8x128xi32, #tpu.memory_space<vmem>>, vector<8x128xi32>
    tpu.vector_store %arg5[%c0_25, %c0_26], %51 {strides = array<i32>} : memref<8x128xi32, #tpu.memory_space<vmem>>, vector<8x128xi32>,
    return
  }
}

</mosaic_0001>

<bundles_post_ra>
// kernel: base_model_forward.1
= control target key start
LH: loop header
LB: loop body
LE: loop exit
PB: predicated region body
PF: predicated region fallthrough
CT: control target
= control target key end

     0   :  { %11 = vsyncpa [#allocation3], 0  ;;  %v802_v1 = vmov 0.0   ;;  %vm803_vm0 = vmmov 0   ;;  %vm70_vm1 = vcmask 1041409   ;;  %vm73_vm2 = vcmask 1042434   ;;  %s1026_s0 = inlined_call_operand.vmem [shape: f32[8,16,128], index: 0, kind: input, shape index: {}]   ;;  %s1027_s1 = inlined_call_operand.vmem [shape: bf16[512,128], index: 1, kind: input, shape index: {}]   ;;  %s1028_s2 = inlined_call_operand.vmem [shape: f32[32,128], index: 2, kind: input, shape index: {}]   ;;  %s1029_s3 = inlined_call_operand.hbm [shape: f32[8,128], index: 3, kind: output, shape index: {0}]   ;;  %s1030_s4 = inlined_call_operand.hbm [shape: f32[8,128], index: 4, kind: output, shape index: {1}]   ;;  %s1031_s5 = inlined_call_operand.vmem [shape: s32[8,128], index: 5, kind: output, shape index: {2}]  }
   0x1   :  { %v718_v0 = vld [vmem:[%s1027_s1 + $0x38] sm:$0xff]   ;;  %634 = vmatprep.subr.bf16.mxu0 %v802_v1  ;;  %654 = vmatprep.subr.bf16.mxu1 %v802_v1  ;;  %v719_v2 = vld [vmem:[%s1027_s1 + $0x30] sm:$0xff]   ;;  %v720_v3 = vld [vmem:[%s1027_s1 + $0x28] sm:$0xff]   ;;  %vm76_vm3 = vcmask 1043459   ;;  %vm79_vm4 = vcmask 1044484   ;;  %vm82_vm5 = vcmask 1045509  }
   0x2   :  { %635 = vmatpush3.bf16.msra.mxu0 %v718_v0  ;;  %650 = vmatprep.mubr.msk.bf16.mxu0 %vm803_vm0, %v802_v1  ;;  %v721_v4 = vld [vmem:[%s1027_s1 + $0x20] sm:$0xff]   ;;  %v21_v6 = vld [vmem:[%s1026_s0 + $0x10] sm:$0x1]  ;;  %v726_v19 = vld [vmem:[%s1027_s1 + $0x78] sm:$0xff]   ;;  %vm85_vm6 = vcmask 1046534   ;;  %vm88_vm7 = vcmask 1047559  }
   0x3   :  { %636 = vmatprep.subr.bf16.mxu0 %v802_v1  ;;  %670 = vmatprep.mubr.msk.bf16.mxu1 %vm803_vm0, %v802_v1  ;;  %v20_v5 = vld [vmem:[%s1026_s0] sm:$0x1]  ;;  %v23_v8 = vld [vmem:[%s1026_s0 + $0x30] sm:$0x1]  ;;  %v45_v12 = vpack.c.bf16 %v21_v6, %v21_v6  ;;  %v722_v29 = vld [vmem:[%s1027_s1 + $0x18] sm:$0xff]  }
   0x4   :  { %v22_v7 = vld [vmem:[%s1026_s0 + $0x20] sm:$0x1]  ;;  %v25_v10 = vld [vmem:[%s1026_s0 + $0x50] sm:$0x1]  ;;  %v44_v11 = vpack.c.bf16 %v20_v5, %v20_v5  ;;  %v47_v16 = vpack.c.bf16 %v23_v8, %v23_v8  ;;  %655 = vmatpush3.bf16.msra.mxu1 %v726_v19  ;;  %v728_v37 = vld [vmem:[%s1027_s1 + $0x68] sm:$0xff]  }
   0x5   :  { %v24_v9 = vld [vmem:[%s1026_s0 + $0x40] sm:$0x1]  ;;  %v46_v13 = vpack.c.bf16 %v22_v7, %v22_v7  ;;  %v27_v15 = vld [vmem:[%s1026_s0 + $0x70] sm:$0x1]  ;;  %v49_v18 = vpack.c.bf16 %v25_v10, %v25_v10  ;;  %v62_v23 = vunpack.c.l.b16 %v45_v12  ;;  %656 = vmatprep.subr.bf16.mxu1 %v802_v1  ;;  %v724_v45 = vld [vmem:[%s1027_s1 + $0x8] sm:$0xff]  }
   0x6   :  { %637 = vmatpush3.bf16.msra.mxu0 %v719_v2  ;;  %v26_v14 = vld [vmem:[%s1026_s0 + $0x60] sm:$0x1]  ;;  %v48_v17 = vpack.c.bf16 %v24_v9, %v24_v9  ;;  %v51_v21 = vpack.c.bf16 %v27_v15, %v27_v15  ;;  %v61_v22 = vunpack.c.l.b16 %v44_v11  ;;  %v64_v25 = vunpack.c.l.b16 %v47_v16  ;;  %v727_v28 = vld [vmem:[%s1027_s1 + $0x70] sm:$0xff]  }
   0x7   :  { %638 = vmatprep.subr.bf16.mxu0 %v802_v1  ;;  %v50_v20 = vpack.c.bf16 %v26_v14, %v26_v14  ;;  %v63_v24 = vunpack.c.l.b16 %v46_v13  ;;  %v66_v27 = vunpack.c.l.b16 %v49_v18  ;;  %v69_v32 = vrot.slane %v62_v23, 7  ;;  %v723_v41 = vld [vmem:[%s1027_s1 + $0x10] sm:$0xff]   ;;  %v725_v48 = vld [vmem:[%s1027_s1] sm:$0xff]  }
   0x8   :  { %v65_v26 = vunpack.c.l.b16 %v48_v17  ;;  %v68_v31 = vunpack.c.l.b16 %v51_v21  ;;  %v75_v34 = vrot.slane %v64_v25, 5  ;;  %657 = vmatpush3.bf16.msra.mxu1 %v727_v28 }
   0x9   :  { %v67_v30 = vunpack.c.l.b16 %v50_v20  ;;  %v72_v33 = vrot.slane %v63_v24, 6  ;;  %v81_v36 = vrot.slane %v66_v27, 3  ;;  %v71_v38 = vsel %vm70_vm1, %v69_v32, %v61_v22  ;;  %658 = vmatprep.subr.bf16.mxu1 %v802_v1 }
   0xa   :  { %639 = vmatpush3.bf16.msra.mxu0 %v720_v3  ;;  %v78_v35 = vrot.slane %v65_v26, 4  ;;  %v87_v40 = vrot.slane %v68_v31, 1 }
   0xb   :  { %640 = vmatprep.subr.bf16.mxu0 %v802_v1  ;;  %v84_v39 = vrot.slane %v67_v30, 2  ;;  %v74_v42 = vsel %vm73_vm2, %v72_v33, %v71_v38 }
   0xc   :  { %v77_v43 = vsel %vm76_vm3, %v75_v34, %v74_v42  ;;  %659 = vmatpush3.bf16.msra.mxu1 %v728_v37 }
   0xd   :  { %v80_v44 = vsel %vm79_vm4, %v78_v35, %v77_v43  ;;  %660 = vmatprep.subr.bf16.mxu1 %v802_v1 }
   0xe   :  { %641 = vmatpush3.bf16.msra.mxu0 %v721_v4  ;;  %v83_v46 = vsel %vm82_vm5, %v81_v36, %v80_v44 }
   0xf   :  { %642 = vmatprep.subr.bf16.mxu0 %v802_v1  ;;  %v86_v47 = vsel %vm85_vm6, %v84_v39, %v83_v46 }
  0x10   :  { %v89_v49 = vsel %vm88_vm7, %v87_v40, %v86_v47 }
  0x11   :  { %v90_v50 = vpack.c.b16 %v89_v49, %v89_v49 }
  0x12   :  { %643 = vmatpush3.bf16.msra.mxu0 %v722_v29 }
  0x13   :  { %644 = vmatprep.subr.bf16.mxu0 %v802_v1 }
  0x16   :  { %645 = vmatpush3.bf16.msra.mxu0 %v723_v41 }
  0x17   :  { %646 = vmatprep.subr.bf16.mxu0 %v802_v1 }
  0x1a   :  { %647 = vmatpush3.bf16.msra.mxu0 %v724_v45 }
  0x1b   :  { %648 = vmatprep.subr.bf16.mxu0 %v802_v1 }
  0x1c   :  { %12 = vsyncpa [#allocation5], 0  ;;  %v729_v51 = vld [vmem:[%s1027_s1 + $0x60] sm:$0xff]   ;;  %v730_v52 = vld [vmem:[%s1027_s1 + $0x58] sm:$0xff]   ;;  %v501_v33 = vlaneseq }
  0x1d   :  { %661 = vmatpush3.bf16.msra.mxu1 %v729_v51  ;;  %v731_v53 = vld [vmem:[%s1027_s1 + $0x50] sm:$0xff]   ;;  %v732_v54 = vld [vmem:[%s1027_s1 + $0x48] sm:$0xff]   ;;  %v733_v55 = vld [vmem:[%s1027_s1 + $0x40] sm:$0xff]  }
  0x1e   :  { %649 = vmatpush3.bf16.msra.mxu0 %v725_v48  ;;  %662 = vmatprep.subr.bf16.mxu1 %v802_v1  ;;  %v734_v56 = vld [vmem:[%s1027_s1 + $0xb8] sm:$0xff]   ;;  %v735_v57 = vld [vmem:[%s1027_s1 + $0xb0] sm:$0xff]   ;;  %v736_v58 = vld [vmem:[%s1027_s1 + $0xa8] sm:$0xff]  }
  0x1f   :  { %674 = vmatprep.subr.bf16.mxu0 %v802_v1  ;;  %v737_v59 = vld [vmem:[%s1027_s1 + $0xa0] sm:$0xff]   ;;  %v738_v60 = vld [vmem:[%s1027_s1 + $0x98] sm:$0xff]   ;;  %v739_v61 = vld [vmem:[%s1027_s1 + $0x90] sm:$0xff]  }
  0x20   :  { %v52_v62 = vld [vmem:[%s1028_s2] sm:$0xff]  ;;  %v740_v7 = vld [vmem:[%s1027_s1 + $0x88] sm:$0xff]   ;;  %v742_v9 = vld [vmem:[%s1027_s1 + $0xf8] sm:$0xff]  }
  0x21   :  { %651 = vmatmul.mubr.bf16.vlgmr.msra.gmra.mxu0 %v90_v50  ;;  %663 = vmatpush3.bf16.msra.mxu1 %v730_v52  ;;  %v741_v8 = vld [vmem:[%s1027_s1 + $0x80] sm:$0xff]   ;;  %v743_v10 = vld [vmem:[%s1027_s1 + $0xf0] sm:$0xff]   ;;  %v744_v11 = vld [vmem:[%s1027_s1 + $0xe8] sm:$0xff]  }
  0x22   :  { %690 = vmatprep.mubr.msk.bf16.mxu0 %vm803_vm0, %v802_v1  ;;  %664 = vmatprep.subr.bf16.mxu1 %v802_v1  ;;  %v198_v12 = vld [vmem:[%s1028_s2 + $0x8] sm:$0xff]  ;;  %v745_v20 = vld [vmem:[%s1027_s1 + $0xe0] sm:$0xff]   ;;  %v746_v21 = vld [vmem:[%s1027_s1 + $0xd8] sm:$0xff]  }
  0x23   :  { %675 = vmatpush3.bf16.msra.mxu0 %v734_v56  ;;  %v747_v22 = vld [vmem:[%s1027_s1 + $0xd0] sm:$0xff]   ;;  %v748_v23 = vld [vmem:[%s1027_s1 + $0xc8] sm:$0xff]   ;;  %v749_v24 = vld [vmem:[%s1027_s1 + $0xc0] sm:$0xff]   ;;  %s804_s1 = smov [#allocation2]  }
  0x24   :  { %676 = vmatprep.subr.bf16.mxu0 %v802_v1  ;;  %v305_v25 = vld [vmem:[%s1028_s2 + $0x10] sm:$0xff]  ;;  %v412_v34 = vld [vmem:[%s1028_s2 + $0x18] sm:$0xff]  ;;  %s540_s2 = sshll.u32 %s804_s1, 4  ;;  %s541_s2 = int_to_ptr.vmem [resolvable:$true] %s540_s2 }
  0x25   :  { %665 = vmatpush3.bf16.msra.mxu1 %v731_v53  ;;  %s758_s28 = scalar_lea.vmem %s541_s2, 128  ;;  %p763_p1 = scmp.lt.s32.totalorder %s541_s2, %s541_s2 }
  0x26   :  { %666 = vmatprep.subr.bf16.mxu1 %v802_v1  ;;  %p759_p0 = scmp.ne.s32.totalorder %s541_s2, %s758_s28  ;;  %p764_p2 = scmp.lt.s32.totalorder %s758_s28, %s758_s28 }
  0x27   :  { %677 = vmatpush3.bf16.msra.mxu0 %v735_v57 }
  0x28   :  { %678 = vmatprep.subr.bf16.mxu0 %v802_v1  ;;  %p765_p3 = por %p764_p2, %p763_p1 }
  0x29   :  { %667 = vmatpush3.bf16.msra.mxu1 %v732_v54 }
  0x2a   :  { %668 = vmatprep.subr.bf16.mxu1 %v802_v1  ;;  %p766_p4 = pnand %p765_p3, %p759_p0 }
  0x2b   :  { %679 = vmatpush3.bf16.msra.mxu0 %v736_v58 }
  0x2c   :  { %680 = vmatprep.subr.bf16.mxu0 %v802_v1 }
  0x2d   :  { %669 = vmatpush3.bf16.msra.mxu1 %v733_v55 }
  0x2e   :  { %694 = vmatprep.subr.bf16.mxu1 %v802_v1 }
  0x2f   :  { %681 = vmatpush3.bf16.msra.mxu0 %v737_v59 }
  0x30   :  { %682 = vmatprep.subr.bf16.mxu0 %v802_v1 }
  0x33   :  { %683 = vmatpush3.bf16.msra.mxu0 %v738_v60 }
  0x34   :  { %684 = vmatprep.subr.bf16.mxu0 %v802_v1 }
  0x37   :  { %685 = vmatpush3.bf16.msra.mxu0 %v739_v61 }
  0x38   :  { %686 = vmatprep.subr.bf16.mxu0 %v802_v1 }
  0x3b   :  { %687 = vmatpush3.bf16.msra.mxu0 %v740_v7 }
  0x3c   :  { %688 = vmatprep.subr.bf16.mxu0 %v802_v1 }
  0x3f   :  { %689 = vmatpush3.bf16.msra.mxu0 %v741_v8 }
  0xe1   :  { %v174_v63 = vpop.f32.mrf.mxu0 }
  0xe2   :  { %v175_v0 = vadd.f32 %v174_v63, %v52_v62 }
  0xe3   :  { %v652_v2 = vpop.f32.mrf.mxu0 }
  0xe4   :  { %750 = vtanh.f32 %v175_v0 }
  0xe5   :  { %v177_v3 = vpop.f32.mrf.mxu0 }
  0xe7   :  { %v653_v4 = vpop.f32.mrf.mxu0 }
  0xf1   :  { %v751_v5 = vpop.eup %750 }
  0xf2   :  { %v197_v6 = vpack.c.bf16 %v751_v5, %v751_v5 }
  0xf4   :  { %671 = vmatmul.mubr.bf16.vlgmr.msra.gmra.mxu1 %v197_v6 }
  0xf5   :  { %710 = vmatprep.mubr.msk.bf16.mxu1 %vm803_vm0, %v802_v1  ;;  %695 = vmatpush3.bf16.msra.mxu1 %v742_v9 }
  0xf6   :  { %696 = vmatprep.subr.bf16.mxu1 %v802_v1 }
  0xf9   :  { %697 = vmatpush3.bf16.msra.mxu1 %v743_v10 }
  0xfa   :  { %698 = vmatprep.subr.bf16.mxu1 %v802_v1 }
  0xfd   :  { %699 = vmatpush3.bf16.msra.mxu1 %v744_v11 }
  0xfe   :  { %700 = vmatprep.subr.bf16.mxu1 %v802_v1 }
 0x101   :  { %701 = vmatpush3.bf16.msra.mxu1 %v745_v20 }
 0x102   :  { %702 = vmatprep.subr.bf16.mxu1 %v802_v1 }
 0x105   :  { %703 = vmatpush3.bf16.msra.mxu1 %v746_v21 }
 0x106   :  { %704 = vmatprep.subr.bf16.mxu1 %v802_v1 }
 0x109   :  { %705 = vmatpush3.bf16.msra.mxu1 %v747_v22 }
 0x10a   :  { %706 = vmatprep.subr.bf16.mxu1 %v802_v1 }
 0x10d   :  { %707 = vmatpush3.bf16.msra.mxu1 %v748_v23 }
 0x10e   :  { %708 = vmatprep.subr.bf16.mxu1 %v802_v1  ;;  %v502_v1 = vand.u32 127, %v501_v33 }
 0x110   :  { %vm503_vm8 = vcmp.lt.s32.totalorder %v502_v1, 8 }
 0x111   :  { %709 = vmatpush3.bf16.msra.mxu1 %v749_v24 }
 0x1b4   :  { %v281_v13 = vpop.f32.mrf.mxu1 }
 0x1b5   :  { %v282_v14 = vadd.f32 %v281_v13, %v198_v12 }
 0x1b6   :  { %v672_v15 = vpop.f32.mrf.mxu1 }
 0x1b7   :  { %v287_v16 = vmax.f32 %v282_v14, 0.0 }
 0x1b8   :  { %v284_v17 = vpop.f32.mrf.mxu1 }
 0x1b9   :  { %v304_v18 = vpack.c.bf16 %v287_v16, %v287_v16 }
 0x1ba   :  { %v673_v19 = vpop.f32.mrf.mxu1 }
 0x1bb   :  { %691 = vmatmul.mubr.bf16.vlgmr.msra.gmra.mxu0 %v304_v18 }
 0x27b   :  { %v388_v26 = vpop.f32.mrf.mxu0 }
 0x27c   :  { %v389_v27 = vadd.f32 %v388_v26, %v305_v25 }
 0x27d   :  { %v692_v28 = vpop.f32.mrf.mxu0 }
 0x27e   :  { %752 = vtanh.f32 %v389_v27 }
 0x27f   :  { %v391_v29 = vpop.f32.mrf.mxu0 }
 0x281   :  { %v693_v30 = vpop.f32.mrf.mxu0 }
 0x28b   :  { %v753_v31 = vpop.eup %752 }
 0x28c   :  { %v411_v32 = vpack.c.bf16 %v753_v31, %v753_v31 }
 0x28e   :  { %711 = vmatmul.mubr.bf16.vlgmr.msra.gmra.mxu1 %v411_v32 }
 0x34e   :  { %v495_v35 = vpop.f32.mrf.mxu1 }
 0x34f   :  { %v496_v36 = vadd.f32 %v495_v35, %v412_v34 }
 0x350   :  { %v712_v37 = vpop.f32.mrf.mxu1 }
 0x351   :  { %531 = vst [vmem:[#allocation2] sm:$0xff] %v496_v36  ;;  %v504_v38 = vsel %vm503_vm8, %v496_v36, -1e+30 }
 0x352   :  { %505 = vmax.xlane.f32.xlu0 %v504_v38  ;;  %v498_v39 = vpop.f32.mrf.mxu1 }
 0x354   :  { %v713_v40 = vpop.f32.mrf.mxu1 }
 0x3db   :  { %v506_v41 = vpop.xlane.xlu0 %505 }
 0x3dc   :  { %v507_v42 = vsub.f32 %v504_v38, %v506_v41  ;;  %vm515_vm9 = vcmp.eq.f32.partialorder %v504_v38, %v506_v41 }
 0x3dd   :  { %v516_v43 = vsel %vm515_vm9, %v502_v1, 128 }
 0x3de   :  { %v508_v44 = vmul.f32 1.442695, %v507_v42  ;;  %v518_v45 = vshra.s32 %v516_v43, 16  ;;  %v517_v49 = vand.u32 65535, %v516_v43 }
 0x3e0   :  { %754 = vpow2.f32 %v508_v44  ;;  %v520_v46 = vcvt.s32.f32 %v518_v45  ;;  %v519_v51 = vcvt.s32.f32 %v517_v49 }
 0x3e2   :  { %521 = vmin.xlane.f32.xlu0 %v520_v46 }
 0x3ed   :  { %v755_v47 = vpop.eup %754 }
 0x3ee   :  { %v510_v48 = vsel %vm503_vm8, %v755_v47, 0.0 }
 0x3ef   :  { %511 = vadd.xlane.f32.xlu1 %v510_v48 }
 0x46b   :  { %v522_v50 = vpop.xlane.xlu0 %521 }
 0x46c   :  { %vm523_vm10 = vcmp.eq.f32.partialorder %v520_v46, %v522_v50 }
 0x46d   :  { %v524_v52 = vsel %vm523_vm10, %v519_v51, inf }
 0x46e   :  { %525 = vmin.xlane.f32.xlu1 %v524_v52 }
 0x478   :  { %v512_v53 = vpop.xlane.xlu1 %511 }
 0x479   :  { %756 = vrcp.f32 %v512_v53 }
 0x47a   :  { %769 = shalt.err (!%p766_p4)
}
 0x47b   :  { %543 = dma.vmem_to_hbm [thread:$0]  %s541_s2, 128, %s1029_s3, [#allocation3]  }
 0x47c   :  { %s805_s6 = smov [#allocation4]  }
 0x47d   :  { %s550_s7 = sshll.u32 %s805_s6, 4  ;;  %s551_s7 = int_to_ptr.vmem [resolvable:$true] %s550_s7 }
 0x47e   :  { %s778_s8 = scalar_lea.vmem %s551_s7, 128  ;;  %p783_p6 = scmp.lt.s32.totalorder %s551_s7, %s551_s7 }
 0x47f   :  { %p779_p5 = scmp.ne.s32.totalorder %s551_s7, %s778_s8  ;;  %p784_p7 = scmp.lt.s32.totalorder %s778_s8, %s778_s8 }
 0x481   :  { %p785_p8 = por %p784_p7, %p783_p6 }
 0x483   :  { %p786_p9 = pnand %p785_p8, %p779_p5 }
 0x486   :  { %v757_v54 = vpop.eup %756 }
 0x487   :  { %v514_v55 = vmul.f32 %v757_v54, %v510_v48 }
 0x489   :  { %532 = vst [vmem:[#allocation4] sm:$0xff] %v514_v55 }
 0x48a   :  { %789 = shalt.err (!%p786_p9)
}
 0x48b   :  { %553 = dma.vmem_to_hbm [thread:$0]  %s551_s7, 128, %s1030_s4, [#allocation5]   ;;  %v528_v56 = vcvt.f32.s32 %v522_v50 }
 0x48d   :  { %v529_v58 = vshll.u32 %v528_v56, 16 }
 0x4f7   :  { %v526_v57 = vpop.xlane.xlu1 %525 }
 0x4f8   :  { %v527_v59 = vcvt.f32.s32 %v526_v57 }
 0x4fa   :  { %v530_v60 = vadd.s32 %v529_v58, %v527_v59 }
 0x4fc   :  { %533 = vst [vmem:[%s1031_s5] sm:$0xff] %v530_v60 }
 0x4fd   :  { %798 = dma.done.wait [#allocation3], 128  }
 0x4fe   :  { %799 = vsyncadd [#allocation3], 4294967168 }
 0x4ff   :  { %800 = dma.done.wait [#allocation5], 128  }
 0x500   :  { %801 = vsyncadd [#allocation5], 4294967168 }
 0x501   :  { %564 = vsyncpa [#allocation3], 1 }
 0x502   :  { %565 = vsyncpa [#allocation5], 1 }

</bundles_post_ra>
